<compile_context>
chip_gen: v7x
topology: tpu7x:2x2x1
jax: 0.10.0
libtpu: 0.0.40
codegen_flags: <defaults>
</compile_context>

<pallas_src>
import jax
import jax.numpy as jnp
from jax import lax
from jax.experimental import pallas as pl
from jax.experimental.pallas import tpu as pltpu

LANE = 128


def _round_up(n, m):
    return ((n + m - 1) // m) * m


def _vmem_limit_bytes():
    """~48 MiB on 128 MiB parts (v5e/v6e), ~38 MiB on 64 MiB parts (v7x)."""
    try:
        cap = pltpu.get_tpu_info().vmem_capacity_bytes
    except Exception:
        cap = 64 * 1024 * 1024          # conservative (v7x-sized) fallback
    return min(48 * 1024 * 1024, int(cap * 0.6))


def _pick_tm(M, Kredp, TN, vmem_limit):
    """Largest TM (<=1024, multiple of 8) whose double-buffered tiles fit ~half the budget."""
    budget = vmem_limit // 2            # headroom for compiler internal scratch
    tm = min(1024, _round_up(M, 8))
    while tm > 8:
        need = (2 * tm * Kredp * 2      # x strip, bf16, double-buffered
                + 2 * Kredp * TN * 2    # weight tile, bf16, double-buffered
                + 2 * tm * TN * 2       # output strip, bf16, double-buffered
                + tm * TN * 4)          # f32 accumulator / epilogue intermediate
        if need <= budget:
            break
        tm = max(8, _round_up(tm // 2, 8))
    return tm


def _dense_kernel(x_ref, w_ref, o_ref):
    # x_ref: (1, TM, Kredp) bf16  im2col row strip (lane-dense reduction dim)
    # w_ref: (Kredp, TN)    bf16  fused conv-weight tile (lane-dense)
    # o_ref: (1, TM, TN)    bf16  output row strip
    # Single chained MXU matmul with f32 accumulation (MRB-friendly on v7x).
    acc = jnp.dot(x_ref[0], w_ref[...], preferred_element_type=jnp.float32)
    # Hardswish in f32: x * relu6(x + 3) / 6.  (f32 epilogue kept; safe on v5e.)
    y = acc * jnp.clip(acc + 3.0, 0.0, 6.0) * (1.0 / 6.0)
    # Dropout: identity in inference mode.
    o_ref[0] = y.astype(o_ref.dtype)


def _im2col(x_nhwc, k):
    """(B, H, W, C) -> (B, Hout*Wout, k*k*C), tap-major to match the weight slab."""
    B, H, W, C = x_nhwc.shape
    Hout, Wout = H - k + 1, W - k + 1
    taps = [x_nhwc[:, dh:dh + Hout, dw:dw + Wout, :]
            for dh in range(k) for dw in range(k)]
    patches = jnp.stack(taps, axis=3)                  # (B, Hout, Wout, k*k, C)
    return patches.reshape(B, Hout * Wout, k * k * C)


def dense_forward(x_nchw, params):
    """x_nchw: (B, C1, H, W) f32.  Returns (B, C2, H-k+1, W-k+1) f32."""
    w_mat = params["w_mat"]                            # (Kredp, C2p) bf16
    k = params["filter_size"]
    C2 = params["num_filters"]
    Kred = params["kred"]
    Kredp, C2p = w_mat.shape

    B, C1, H, W = x_nchw.shape
    Hout, Wout = H - k + 1, W - k + 1
    M = Hout * Wout

    TN = 256 if C2p % 256 == 0 else 128
    vmem_limit = _vmem_limit_bytes()
    TM = _pick_tm(M, Kredp, TN, vmem_limit)
    Mp = _round_up(M, TM)

    # NCHW -> NHWC, im2col, zero-pad rows + reduction dim, bf16 MXU operands.
    x_nhwc = jnp.transpose(x_nchw, (0, 2, 3, 1))
    patches = _im2col(x_nhwc, k)                                   # (B, M, k*k*C1)
    patches = jnp.pad(patches, ((0, 0), (0, Mp - M), (0, Kredp - Kred)))
    patches = patches.astype(jnp.bfloat16)

    # Grid: (batch, C2 tiles, row strips).  Strip axis innermost so the weight
    # tile is invariant across it (not re-DMA'd per strip); all axes parallel.
    grid = (B, C2p // TN, Mp // TM)

    cost = pl.CostEstimate(
        flops=2 * B * Mp * Kredp * C2p,
        transcendentals=0,
        bytes_accessed=(B * Mp * Kredp * 2            # im2col slab (bf16)
                        + Kredp * C2p * 2             # weights (bf16, counted once)
                        + B * Mp * C2p * 2))          # output (bf16)

    out_flat = pl.pallas_call(
        _dense_kernel,
        out_shape=jax.ShapeDtypeStruct((B, Mp, C2p), jnp.bfloat16),
        grid_spec=pltpu.PrefetchScalarGridSpec(
            num_scalar_prefetch=0,
            grid=grid,
            in_specs=[
                pl.BlockSpec((1, TM, Kredp), lambda b, n, m: (b, m, 0)),
                pl.BlockSpec((Kredp, TN), lambda b, n, m: (0, n)),
            ],
            out_specs=pl.BlockSpec((1, TM, TN), lambda b, n, m: (b, m, n)),
        ),
        compiler_params=pltpu.CompilerParams(
            dimension_semantics=("parallel", "parallel", "parallel"),
            vmem_limit_bytes=vmem_limit),
        cost_estimate=cost,
    )(patches, w_mat)

    # Trim padded rows / channels, back to NCHW, restore the module's f32 dtype.
    out = out_flat[:, :M, :C2].reshape(B, Hout, Wout, C2)
    return jnp.transpose(out, (0, 3, 1, 2)).astype(jnp.float32)


def init_params(key, num_channels, num_filters, filter_size, dropout_prob):
    """Deterministic synthetic Conv2d weight, prepared as a lane-dense matmul slab."""
    C1, C2, k = num_channels, num_filters, filter_size
    Kred = k * k * C1
    Kredp = _round_up(Kred, LANE)
    C2p = _round_up(C2, LANE)

    w_oihw = jax.random.normal(key, (C2, C1, k, k), jnp.float32) * 0.1

    # OIHW -> HWIO -> (k*k*C1, C2) tap-major slab, zero-padded, lane-dense, bf16.
    w_hwio = jnp.transpose(w_oihw, (2, 3, 1, 0)).reshape(Kred, C2)
    w_mat = jnp.pad(w_hwio, ((0, Kredp - Kred), (0, C2p - C2))).astype(jnp.bfloat16)

    return {
        "w_mat": w_mat,
        "filter_size": k,
        "num_filters": C2,
        "kred": Kred,
        "dropout_prob": dropout_prob,
        "_w_oihw": w_oihw,          # kept only for the pure-JAX reference
    }


def dense_reference(x_nchw, params):
    """Pure-JAX NCHW reference (f32) used to validate the Pallas kernel."""
    w = params["_w_oihw"]
    dn = lax.conv_dimension_numbers(x_nchw.shape, w.shape, ("NCHW", "OIHW", "NCHW"))
    y = lax.conv_general_dilated(x_nchw, w, (1, 1), "VALID", dimension_numbers=dn)
    y = y * jnp.clip(y + 3.0, 0.0, 6.0) / 6.0      # hardswish
    return y                                        # dropout: inference no-op


if __name__ == "__main__":
    key = jax.random.PRNGKey(0)
    kx, kp = jax.random.split(key)

    B, C1, C2, H, W, K, P = 2, 4, 8, 16, 16, 3, 0.1
    x = jax.random.normal(kx, (B, C1, H, W), jnp.float32)
    params = init_params(kp, C1, C2, K, P)

    out = jax.block_until_ready(dense_forward(x, params))
    ref = dense_reference(x, params)

    assert out.shape == (B, C2, H - K + 1, W - K + 1)
    max_err = float(jnp.max(jnp.abs(out - ref)))
    # bf16 matmul operands + bf16 output writeback -> looser tolerance than f32.
    assert jnp.allclose(out, ref, atol=3e-2, rtol=3e-2), max_err

    print("KERNEL_OK")
</pallas_src>

<mosaic_0001>
module attributes {stable_mosaic.version = 11 : i64} {
  func.func @_dense_kernel(%arg0: i32, %arg1: i32, %arg2: i32, %arg3: memref<1x200x128xbf16, #tpu.memory_space<vmem>>, %arg4: memref<128x128xbf16, #tpu.memory_space<vmem>>, %arg5: memref<1x200x128xbf16, #tpu.memory_space<vmem>>) attributes {dimension_semantics = [#tpu.dimension_semantics<parallel>, #tpu.dimension_semantics<parallel>, #tpu.dimension_semantics<parallel>], iteration_bounds = array<i64: 2, 1, 1>, scalar_prefetch = 0 : i64, scratch_operands = 0 : i64, tpu.core_type = #tpu.core_type<tc>, window_params = [{transform_indices = @transform_0, window_bounds = array<i64: 1, 200, 128>}, {transform_indices = @transform_1, window_bounds = array<i64: 128, 128>}, {transform_indices = @transform_2, window_bounds = array<i64: 1, 200, 128>}]} {
    %c0 = arith.constant 0 : index
    %c0_0 = arith.constant 0 : index
    %c0_1 = arith.constant 0 : index
    %0 = vector.load %arg3[%c0, %c0_0, %c0_1] : memref<1x200x128xbf16, #tpu.memory_space<vmem>>, vector<1x200x128xbf16>
    %1 = vector.shape_cast %0 : vector<1x200x128xbf16> to vector<200x128xbf16>
    %c0_2 = arith.constant 0 : index
    %c0_3 = arith.constant 0 : index
    %2 = vector.load %arg4[%c0_2, %c0_3] : memref<128x128xbf16, #tpu.memory_space<vmem>>, vector<128x128xbf16>
    %cst = arith.constant dense<0.000000e+00> : vector<200x128xf32>
    %3 = tpu.matmul %1, %2, %cst {dimension_numbers = #tpu.dot_dimension_numbers<[1], [0], [0], [1], [0, 0, 1, 1], [], []>} : vector<200x128xbf16>, vector<128x128xbf16>, vector<200x128xf32> -> vector<200x128xf32>
    %cst_4 = arith.constant 3.000000e+00 : f32
    %4 = vector.broadcast %cst_4 : f32 to vector<200x128xf32>
    %5 = arith.addf %3, %4 : vector<200x128xf32>
    %cst_5 = arith.constant 0.000000e+00 : f32
    %cst_6 = arith.constant 6.000000e+00 : f32
    %6 = vector.broadcast %cst_5 : f32 to vector<200x128xf32>
    %7 = arith.maximumf %6, %5 : vector<200x128xf32>
    %8 = vector.broadcast %cst_6 : f32 to vector<200x128xf32>
    %9 = arith.minimumf %8, %7 : vector<200x128xf32>
    %10 = arith.mulf %3, %9 : vector<200x128xf32>
    %cst_7 = arith.constant 0.166666672 : f32
    %11 = vector.broadcast %cst_7 : f32 to vector<200x128xf32>
    %12 = arith.mulf %10, %11 : vector<200x128xf32>
    %13 = arith.truncf %12 : vector<200x128xf32> to vector<200x128xbf16>
    %c0_8 = arith.constant 0 : index
    %c0_9 = arith.constant 0 : index
    %c0_10 = arith.constant 0 : index
    %14 = vector.load %arg5[%c0_8, %c0_9, %c0_10] : memref<1x200x128xbf16, #tpu.memory_space<vmem>>, vector<1x200x128xbf16>
    %15 = vector.shape_cast %14 : vector<1x200x128xbf16> to vector<200x128xbf16>
    %16 = vector.shape_cast %13 : vector<200x128xbf16> to vector<1x200x128xbf16>
    tpu.vector_store %arg5[%c0_8, %c0_9, %c0_10], %16 {strides = array<i32>} : memref<1x200x128xbf16, #tpu.memory_space<vmem>>, vector<1x200x128xbf16>,
    return
  }
  func.func @transform_0(%arg0: i32, %arg1: i32, %arg2: i32) -> (i32, i32, i32) {
    %c0_i32 = arith.constant 0 : i32
    %c0_i32_0 = arith.constant 0 : i32
    return %arg0, %arg2, %c0_i32 : i32, i32, i32
  }
  func.func @transform_1(%arg0: i32, %arg1: i32, %arg2: i32) -> (i32, i32) {
    %c0_i32 = arith.constant 0 : i32
    %c0_i32_0 = arith.constant 0 : i32
    return %c0_i32, %arg1 : i32, i32
  }
  func.func @transform_2(%arg0: i32, %arg1: i32, %arg2: i32) -> (i32, i32, i32) {
    %c0_i32 = arith.constant 0 : i32
    return %arg0, %arg2, %arg1 : i32, i32, i32
  }
}

</mosaic_0001>

<bundles_post_ra>
// kernel: tpu_custom_call.1
= control target key start
LH: loop header
LB: loop body
LE: loop exit
PB: predicated region body
PF: predicated region fallthrough
CT: control target
= control target key end

     0   :  { %7 = vsyncpa [#allocation3], 0  ;;  %s1714_s0 = inlined_call_operand.hbm [shape: bf16[2,200,128], index: 0, kind: input, shape index: {}]   ;;  %s1715_s1 = inlined_call_operand.hbm [shape: bf16[128,128], index: 1, kind: input, shape index: {}]   ;;  %s1716_s2 = inlined_call_operand.hbm [shape: bf16[2,200,128], index: 2, kind: output, shape index: {}]  }
   0x1   :  { %9 = vsyncpa [#allocation3 + $0x1], 0 }
   0x2   :  { %10 = vsyncpa [#allocation6], 0 }
   0x3   :  { %11 = vsyncpa [#allocation4], 0 }
   0x4   :  { %13 = vsyncpa [#allocation4 + $0x1], 0  ;;  %s1418_s9 = smov 0   ;;  %s1420_s10 = smov 0  }
   0x5   :  { %s1422_s11 = smov 0   ;;  %s1424_s12 = smov 0  }
   0x6   :  { %s1426_s13 = smov 0   ;;  %s1428_s14 = smov 0  }
   0x7 LB: > { %s886_s15 = sadd.s32 4294967295, %s1392_s14   ;;  %s887_s16 = sadd.s32 4294967294, %s1392_s14   ;;  %s1392_s14 = sphi %s1428_s14, %s19_s14   ;;  %s1388_s13 = sphi %s1426_s13, %s1739_s13   ;;  %s1384_s12 = sphi %s1424_s12, %s1738_s12   ;;  %s1380_s11 = sphi %s1422_s11, %s1737_s11   ;;  %s1376_s10 = sphi %s1420_s10, %s1736_s10   ;;  %s1372_s9 = sphi %s1418_s9, %s1735_s9  }
   0x8   : > { %p60_p0 = scmp.ne.s32.totalorder %s1376_s10, %s1372_s9  ;;  %p1452_p1 = scmp.eq.s32.totalorder %s886_s15, 0 }
   0x9   : > { %p1456_p2 = scmp.eq.s32.totalorder %s886_s15, 1  ;;  %p120_p3 = scmp.eq.s32.totalorder %s887_s16, 1 }
   0xa   : > { %s1721_s17 = scalar_select %p1452_p1, 1, 0 }
   0xb   : > { %s1722_s18 = scalar_select %p1456_p2, 1, 0 }
   0xc   : > { %p1462_p4 = por %p1452_p1, %p60_p0  ;;  %p888_p5 = scmp.ge.s32.totalorder %s1392_s14, 1 }
   0xd   : > { %p1467_p6 = por %p120_p3, %p60_p0  ;;  %p127_p7 = scmp.lt.s32.totalorder %s1392_s14, 3 }
   0xe   : > { %s1723_s19 = scalar_select %p1462_p4, 1, 0 }
   0xf   : > { %s1724_s20 = scalar_select %p1467_p6, 1, 0 }
  0x10   : > { %p1472_p8 = pnand %p888_p5, %p127_p7  ;;  %s1394_s22 = smov [#allocation5]  }
  0x11   : > { %s141_s23 = sshll.u32 %s1394_s22, 4  ;;  %s38_s25 = sadd.s32 1, %s1388_s13  ;;  %s142_s23 = int_to_ptr.vmem [resolvable:$true] %s141_s23 }
  0x12   : > { %s1725_s21 = scalar_select %p1472_p8, 1, 0 }
  0x13   : > { %p1156_p9 = pneg %p1472_p8  ;;  %s1248_s28 = scalar_lea.hbm %s1715_s1, 1024 }
  0x14   : > { %p1249_p12 = scmp.ne.s32.totalorder %s1715_s1, %s1248_s28  ;;  %p1255_p5 = scmp.lt.u32.totalorder %s1248_s28, %s1715_s1 }
  0x15   : > { %p1481_p11 = pnand %p1156_p9, %p1452_p1 }
  0x17   : > { %p1250_p13 = pneg %p1481_p11 }
  0x19   : > { %p1251_p0 = pnand %p1250_p13, %p1249_p12 }
  0x1b   : > { %p1252_p3 = pneg %p1251_p0 }
  0x1d   : > { %p1257_p7 = pnand %p1255_p5, %p1252_p3 }
  0x1f   : > { %1260 = shalt.err (!%p1257_p7)
}
  0x20   : > { %s1261_s5 = scalar_lea.vmem %s142_s23, 1024  ;;  %p1269_p1 = scmp.lt.s32.totalorder %s142_s23, %s142_s23 }
  0x21   : > { %p1262_p9 = scmp.ne.s32.totalorder %s142_s23, %s1261_s5  ;;  %p1270_p4 = scmp.lt.s32.totalorder %s1261_s5, %s1261_s5 }
  0x23   : > { %p1264_p10 = pnand %p1262_p9, %p1250_p13  ;;  %p1271_p8 = por %p1270_p4, %p1269_p1 }
  0x25   : > { %p1265_p6 = pneg %p1264_p10 }
  0x27   : > { %p1272_p2 = pnand %p1271_p8, %p1265_p6 }
  0x29   : > { %1275 = shalt.err (!%p1272_p2)
}
  0x2a   : > { %s1395_s6 = smov 64   ;;  %s1396_s7 = smov 4  }
  0x2b   : > { %1159 = dma.hbm_to_vmem [thread:$0]  (!%p1481_p11), %s1715_s1, 1024, %s142_s23, [#allocation6], %s1395_s6, %s1395_s6, %s1396_s7  }
  0x2c   : > { %p40_p1 = scmp.ge.s32.totalorder %s38_s25, 2  ;;  %s47_s16 = sadd.s32 1, %s1380_s11 }
  0x2d   : > { %p54_p2 = scmp.ne.s32.totalorder %s1380_s11, %s1376_s10  ;;  %p55_p4 = scmp.eq.s32.totalorder %s1392_s14, 0 }
  0x2e   : > { %s1741_s25 = smov (%p40_p1, %s38_s25), 0  ;;  %p1727_p8 = scmp.ne.s32.totalorder %s1722_s18, 0 }
  0x2f   : > { %p56_p6 = por %p55_p4, %p54_p2  ;;  %s42_s24 = ssub.s32 %s1388_s13, %s1741_s25 }
  0x30   : > { %p1513_p10 = por %p1727_p8, %p54_p2  ;;  %p1169_p12 = scmp.lt.s32.totalorder %s1392_s14, 2 }
  0x31   : > { %p45_p13 = scmp.eq.s32.totalorder %s42_s24, 0  ;;  %s155_s26 = sand.u32 1, %s1380_s11  }
  0x32   : > { %s1144_s27 = smul.u32 100, %s155_s26  ;;  %p1525_p11 = pnand %p1169_p12, %p56_p6 }
  0x33   : > { %s1522_s28 = scalar_select %p45_p13, %s1380_s11, %s47_s16  }
  0x34   : > { %s1145_s23 = smul.u32 1600, %s1388_s13  ;;  %s159_s29 = scalar_lea.vmem [#allocation2], %s1144_s27 }
  0x35   : > { %s168_s30 = sshll.u32 %s159_s29, 4  ;;  %s1536_s8 = scalar_lea.sflag [#allocation3], %s155_s26  ;;  %s1534_s30 = int_to_ptr.vmem [resolvable:$true] %s168_s30 }
  0x36   : > { %s1532_s5 = scalar_lea.hbm %s1714_s0, %s1145_s23  ;;  %p1278_p3 = pneg %p1525_p11 }
  0x37   : > { %s1276_s15 = scalar_lea.hbm %s1532_s5, 1600  ;;  %s1281_s27 = scalar_lea.hbm %s1714_s0, 3200 }
  0x38   : > { %p1277_p0 = scmp.ne.s32.totalorder %s1532_s5, %s1276_s15  ;;  %p1282_p9 = scmp.lt.u32.totalorder %s1532_s5, %s1714_s0 }
  0x39   : > { %p1283_p1 = scmp.lt.u32.totalorder %s1281_s27, %s1276_s15  ;;  %p1285_p4 = scmp.lt.u32.totalorder %s1276_s15, %s1532_s5 }
  0x3a   : > { %p1279_p5 = pnand %p1278_p3, %p1277_p0 }
  0x3b   : > { %p1284_p2 = por %p1283_p1, %p1282_p9 }
  0x3c   : > { %p1280_p7 = pneg %p1279_p5 }
  0x3d   : > { %p1286_p6 = por %p1285_p4, %p1284_p2 }
  0x3f   : > { %p1287_p8 = pnand %p1286_p6, %p1280_p7 }
  0x41   : > { %1290 = shalt.err (!%p1287_p8)
}
  0x42   : > { %s1291_s26 = scalar_lea.vmem %s1534_s30, 1600  ;;  %s1397_s4 = smov [#allocation2]  }
  0x43   : > { %p1292_p12 = scmp.ne.s32.totalorder %s1534_s30, %s1291_s26  ;;  %s1296_s18 = sshll.u32 %s1397_s4, 4  ;;  %s1297_s18 = int_to_ptr.vmem [resolvable:$false] %s1296_s18 }
  0x44   : > { %s1298_s16 = scalar_lea.vmem %s1297_s18, 3200  ;;  %p1299_p5 = scmp.lt.s32.totalorder %s1534_s30, %s1297_s18 }
  0x45   : > { %p1294_p13 = pnand %p1292_p12, %p1278_p3  ;;  %p1300_p9 = scmp.lt.s32.totalorder %s1298_s16, %s1291_s26 }
  0x47   : > { %p1295_p0 = pneg %p1294_p13  ;;  %p1301_p1 = por %p1300_p9, %p1299_p5 }
  0x49   : > { %p1302_p2 = pnand %p1301_p1, %p1295_p0 }
  0x4b   : > { %1305 = shalt.err (!%p1302_p2)
}
  0x4c   : > { %1163 = dma.hbm_to_vmem [thread:$0]  (!%p1525_p11), %s1532_s5, 1600, %s1534_s30, %s1536_s8, %s1395_s6, %s1395_s6, %s1396_s7  }
  0x4d   : > { %p1730_p3 = scmp.ne.s32.totalorder %s1725_s21, 0 }
  0x4e   : > { %s1570_s15 = sand.u32 (!%p1730_p3), 1, %s1376_s10   ;;  %p1731_p7 = scmp.ne.s32.totalorder (!%p1730_p3), %s1723_s19, 0 }
  0x4f   : > { %180 = sbr.rel (%p1730_p3) target bundleno = 413 (0x19d), region = 28  ;;  %s183_s27 = scalar_lea.sflag (!%p1730_p3), [#allocation3], %s1570_s15 }
  0x50   : > { %s1146_s24 = smul.u32 (!%p1730_p3), 100, %s1570_s15 }
  0x52   : > { %s1576_s3 = scalar_lea.vmem (!%p1730_p3), [#allocation2], %s1146_s24 }
  0x56   : > { %1359 = dma.done.wait (%p1731_p7), %s183_s27, 1600  }
  0x57   : > { %1361 = vsyncadd (%p1731_p7), %s183_s27, 4294965696  ;;  %p1732_p11 = scmp.ne.s32.totalorder %s1721_s17, 0 }
  0x59   : > { %1363 = dma.done.wait (%p1732_p11), [#allocation6], 1024  }
  0x5a   : > { %1365 = vsyncadd (%p1732_p11), [#allocation6], 4294966272  ;;  %v1398_v0 = vmov 0.0   ;;  %vm1399_vm0 = vmmov 0   ;;  %v1227_v1 = vld [vmem:[#allocation5] sm:$0xff]   ;;  %v1228_v2 = vld [vmem:[#allocation5 + $0x8] sm:$0xff]  }
  0x5b   : > { %1060 = vmatprep.subr.bf16.mxu0 %v1398_v0  ;;  %1128 = vmatprep.subr.bf16.mxu1 %v1398_v0  ;;  %v1229_v3 = vld [vmem:[#allocation5 + $0x10] sm:$0xff]   ;;  %v1230_v4 = vld [vmem:[#allocation5 + $0x18] sm:$0xff]   ;;  %v1231_v5 = vld [vmem:[#allocation5 + $0x20] sm:$0xff]   ;;  %s1643_s17 = scalar_lea.vmem [#allocation7], %s1146_s24  ;;  %s1147_s19 = smul.u32 1600, %s1384_s12 }
  0x5c   : > { %1076 = vmatprep.mubr.msk.bf16.mxu0 %vm1399_vm0, %v1398_v0  ;;  %1104 = vmatprep.mubr.msk.bf16.mxu1 %vm1399_vm0, %v1398_v0  ;;  %v1232_v6 = vld [vmem:[#allocation5 + $0x28] sm:$0xff]   ;;  %v1233_v7 = vld [vmem:[#allocation5 + $0x30] sm:$0xff]   ;;  %v1234_v8 = vld [vmem:[#allocation5 + $0x38] sm:$0xff]   ;;  %s783_s21 = sshll.u32 %s1643_s17, 4  ;;  %s767_s5 = scalar_lea.sflag [#allocation4], %s1570_s15  ;;  %s1664_s21 = int_to_ptr.vmem [resolvable:$true] %s783_s21 }
  0x5d   : > { %1061 = vmatpush3.bf16.msra.mxu0 %v1227_v1  ;;  %1136 = vmatpush3.bf16.msra.mxu1 %v1227_v1  ;;  %v1235_v9 = vld [vmem:[%s1576_s3] sm:$0xff]   ;;  %v1236_v10 = vld [vmem:[%s1576_s3 + $0x38] sm:$0xff]   ;;  %v1237_v11 = vld [vmem:[%s1576_s3 + $0x8] sm:$0xff]   ;;  %s1662_s30 = scalar_lea.hbm %s1716_s2, %s1147_s19  ;;  %s1306_s8 = scalar_lea.vmem %s1664_s21, 1600 }
  0x5e   : > { %1062 = vmatprep.subr.bf16.mxu0 %v1398_v0  ;;  %1129 = vmatprep.subr.bf16.mxu1 %v1398_v0  ;;  %v1238_v12 = vld [vmem:[%s1576_s3 + $0x40] sm:$0xff]   ;;  %v1239_v13 = vld [vmem:[%s1576_s3 + $0x10] sm:$0xff]   ;;  %v1240_v14 = vld [vmem:[%s1576_s3 + $0x48] sm:$0xff]   ;;  %p1307_p4 = scmp.ne.s32.totalorder %s1664_s21, %s1306_s8  ;;  %s1400_s12 = smov [#allocation7]  }
  0x5f   : > { %v1241_v15 = vld [vmem:[%s1576_s3 + $0x18] sm:$0xff]   ;;  %v1242_v16 = vld [vmem:[%s1576_s3 + $0x50] sm:$0xff]   ;;  %v1243_v17 = vld [vmem:[%s1576_s3 + $0x20] sm:$0xff]   ;;  %s1310_s23 = sshll.u32 %s1400_s12, 4  ;;  %s1311_s23 = int_to_ptr.vmem [resolvable:$false] %s1310_s23 }
  0x60   : > { %v1244_v18 = vld [vmem:[%s1576_s3 + $0x58] sm:$0xff]   ;;  %v1245_v19 = vld [vmem:[%s1576_s3 + $0x28] sm:$0xff]   ;;  %v1246_v20 = vld [vmem:[%s1576_s3 + $0x60] ss:$0 sps:$4 sm:$0xff]   ;;  %p1308_p6 = pnand %p1307_p4, %p1513_p10  ;;  %s1312_s29 = scalar_lea.vmem %s1311_s23, 3200 }
  0x61   : > { %1063 = vmatpush3.bf16.msra.mxu0 %v1228_v2  ;;  %1137 = vmatpush3.bf16.msra.mxu1 %v1228_v2  ;;  %v1247_v21 = vld [vmem:[%s1576_s3 + $0x30] sm:$0xff]   ;;  %p1313_p12 = scmp.lt.s32.totalorder %s1664_s21, %s1311_s23  ;;  %p1314_p13 = scmp.lt.s32.totalorder %s1312_s29, %s1306_s8 }
  0x62   : > { %1064 = vmatprep.subr.bf16.mxu0 %v1398_v0  ;;  %1130 = vmatprep.subr.bf16.mxu1 %v1398_v0  ;;  %p1309_p8 = pneg %p1308_p6 }
  0x63   : > { %p1315_p0 = por %p1314_p13, %p1313_p12 }
  0x65   : > { %1065 = vmatpush3.bf16.msra.mxu0 %v1229_v3  ;;  %1138 = vmatpush3.bf16.msra.mxu1 %v1229_v3  ;;  %p1316_p5 = pnand %p1315_p0, %p1309_p8 }
  0x66   : > { %1066 = vmatprep.subr.bf16.mxu0 %v1398_v0  ;;  %1131 = vmatprep.subr.bf16.mxu1 %v1398_v0 }
  0x69   : > { %1067 = vmatpush3.bf16.msra.mxu0 %v1230_v4  ;;  %1139 = vmatpush3.bf16.msra.mxu1 %v1230_v4 }
  0x6a   : > { %1068 = vmatprep.subr.bf16.mxu0 %v1398_v0  ;;  %1132 = vmatprep.subr.bf16.mxu1 %v1398_v0 }
  0x6d   : > { %1069 = vmatpush3.bf16.msra.mxu0 %v1231_v5  ;;  %1140 = vmatpush3.bf16.msra.mxu1 %v1231_v5 }
  0x6e   : > { %1070 = vmatprep.subr.bf16.mxu0 %v1398_v0  ;;  %1133 = vmatprep.subr.bf16.mxu1 %v1398_v0 }
  0x71   : > { %1071 = vmatpush3.bf16.msra.mxu0 %v1232_v6  ;;  %1141 = vmatpush3.bf16.msra.mxu1 %v1232_v6 }
  0x72   : > { %1072 = vmatprep.subr.bf16.mxu0 %v1398_v0  ;;  %1134 = vmatprep.subr.bf16.mxu1 %v1398_v0 }
  0x75   : > { %1073 = vmatpush3.bf16.msra.mxu0 %v1233_v7  ;;  %1142 = vmatpush3.bf16.msra.mxu1 %v1233_v7 }
  0x76   : > { %1074 = vmatprep.subr.bf16.mxu0 %v1398_v0  ;;  %1135 = vmatprep.subr.bf16.mxu1 %v1398_v0 }
  0x79   : > { %1075 = vmatpush3.bf16.msra.mxu0 %v1234_v8  ;;  %1143 = vmatpush3.bf16.msra.mxu1 %v1234_v8 }
  0x7c   : > { %1077 = vmatmul.mubr.bf16.vlgmr.msra.gmra.mrb[0].mxu0 %v1235_v9  ;;  %1105 = vmatmul.mubr.bf16.vlgmr.msra.gmra.mrb[0].mxu1 %v1236_v10 }
  0x7d   : > { %1080 = vmatprep.mubr.msk.bf16.mxu0 %vm1399_vm0, %v1398_v0  ;;  %1108 = vmatprep.mubr.msk.bf16.mxu1 %vm1399_vm0, %v1398_v0 }
  0x84   : > { %1081 = vmatmul.mubr.bf16.gmra.mrb[4].mxu0 %v1237_v11  ;;  %1109 = vmatmul.mubr.bf16.gmra.mrb[4].mxu1 %v1238_v12 }
  0x85   : > { %1084 = vmatprep.mubr.msk.bf16.mxu0 %vm1399_vm0, %v1398_v0  ;;  %1112 = vmatprep.mubr.msk.bf16.mxu1 %vm1399_vm0, %v1398_v0 }
  0x8c   : > { %1085 = vmatmul.mubr.bf16.gmra.mrb[8].mxu0 %v1239_v13  ;;  %1113 = vmatmul.mubr.bf16.gmra.mrb[8].mxu1 %v1240_v14 }
  0x8d   : > { %1088 = vmatprep.mubr.msk.bf16.mxu0 %vm1399_vm0, %v1398_v0  ;;  %1116 = vmatprep.mubr.msk.bf16.mxu1 %vm1399_vm0, %v1398_v0 }
  0x94   : > { %1089 = vmatmul.mubr.bf16.gmra.mrb[12].mxu0 %v1241_v15  ;;  %1117 = vmatmul.mubr.bf16.gmra.mrb[12].mxu1 %v1242_v16 }
  0x95   : > { %1092 = vmatprep.mubr.msk.bf16.mxu0 %vm1399_vm0, %v1398_v0  ;;  %1120 = vmatprep.mubr.msk.bf16.mxu1 %vm1399_vm0, %v1398_v0 }
  0x9c   : > { %1093 = vmatmul.mubr.bf16.gmra.mrb[16].mxu0 %v1243_v17  ;;  %1121 = vmatmul.mubr.bf16.gmra.mrb[16].mxu1 %v1244_v18 }
  0x9d   : > { %1096 = vmatprep.mubr.msk.bf16.mxu0 %vm1399_vm0, %v1398_v0  ;;  %1124 = vmatprep.mubr.msk.bf16.mxu1 %vm1399_vm0, %v1398_v0 }
  0xa4   : > { %1097 = vmatmul.mubr.bf16.gmra.mrb[20].mxu0 %v1245_v19  ;;  %1125 = vmatmul.mubr.bf16.gmra.mrb[20].mxu1 %v1246_v20 }
  0xa5   : > { %1100 = vmatprep.mubr.msk.bf16.mxu0 %vm1399_vm0, %v1398_v0 }
  0xac   : > { %1101 = vmatmul.mubr.bf16.gmra.mrb[24].mxu0 %v1247_v21 }
 0x14f   : > { %v413_v22 = vpop.f32.mrb[0].mxu0  ;;  %v469_v23 = vpop.f32.mrb[0].mxu1 }
 0x150   : > { %v515_v24 = vadd.f32 3.0, %v413_v22  ;;  %v1078_v25 = vpop.f32.mrb[1].mxu0  ;;  %v529_v26 = vadd.f32 3.0, %v469_v23  ;;  %v1106_v27 = vpop.f32.mrb[1].mxu1 }
 0x151   : > { %v416_v28 = vpop.f32.mrb[2].mxu0  ;;  %v472_v29 = vpop.f32.mrb[2].mxu1 }
 0x152   : > { %v540_v30 = vmax.f32 %v515_v24, 0.0  ;;  %v516_v31 = vadd.f32 3.0, %v416_v28  ;;  %v554_v32 = vmax.f32 %v529_v26, 0.0  ;;  %v1079_v33 = vpop.f32.mrb[3].mxu0  ;;  %v530_v34 = vadd.f32 3.0, %v472_v29  ;;  %v1107_v35 = vpop.f32.mrb[3].mxu1 }
 0x154   : > { %v565_v36 = vmin.f32 %v540_v30, 6.0  ;;  %v541_v37 = vmax.f32 %v516_v31, 0.0  ;;  %v579_v38 = vmin.f32 %v554_v32, 6.0  ;;  %v555_v39 = vmax.f32 %v530_v34, 0.0 }
 0x156   : > { %v590_v40 = vmul.f32 %v565_v36, %v413_v22  ;;  %v566_v41 = vmin.f32 %v541_v37, 6.0  ;;  %v604_v42 = vmul.f32 %v579_v38, %v469_v23  ;;  %v580_v43 = vmin.f32 %v555_v39, 6.0 }
 0x157   : > { %v421_v44 = vpop.f32.mrb[4].mxu0  ;;  %v477_v45 = vpop.f32.mrb[4].mxu1 }
 0x158   : > { %v591_v46 = vmul.f32 %v566_v41, %v416_v28  ;;  %v629_v47 = vmul.f32 0.16666667, %v604_v42  ;;  %v605_v48 = vmul.f32 %v580_v43, %v472_v29  ;;  %v1082_v49 = vpop.f32.mrb[5].mxu0  ;;  %v1110_v50 = vpop.f32.mrb[5].mxu1  ;;  %v615_v51 = vmul.f32 0.16666667, %v590_v40 }
 0x159   : > { %v517_v52 = vadd.f32 3.0, %v421_v44  ;;  %v424_v53 = vpop.f32.mrb[6].mxu0  ;;  %v531_v54 = vadd.f32 3.0, %v477_v45  ;;  %v480_v55 = vpop.f32.mrb[6].mxu1 }
 0x15a   : > { %v616_v56 = vmul.f32 0.16666667, %v591_v46  ;;  %v630_v57 = vmul.f32 0.16666667, %v605_v48  ;;  %v518_v58 = vadd.f32 3.0, %v424_v53  ;;  %v1083_v59 = vpop.f32.mrb[7].mxu0 }
 0x15b   : > { %v542_v60 = vmax.f32 %v517_v52, 0.0  ;;  %v556_v61 = vmax.f32 %v531_v54, 0.0  ;;  %v532_v62 = vadd.f32 3.0, %v480_v55  ;;  %v1111_v63 = vpop.f32.mrb[7].mxu1 }
 0x15c   : > { %v971_v0 = vpack.c.bf16 %v616_v56, %v615_v51  ;;  %v1006_v1 = vpack.c.bf16 %v630_v57, %v629_v47  ;;  %v543_v2 = vmax.f32 %v518_v58, 0.0 }
 0x15d   : > { %v567_v3 = vmin.f32 %v542_v60, 6.0  ;;  %v581_v4 = vmin.f32 %v556_v61, 6.0  ;;  %v557_v5 = vmax.f32 %v532_v62, 0.0 }
 0x15e   : > { %972 = vst [vmem:[%s1643_s17] sm:$0xff] %v971_v0   ;;  %1034 = vst [vmem:[%s1643_s17 + $0x38] sm:$0xff] %v1006_v1   ;;  %v568_v6 = vmin.f32 %v543_v2, 6.0 }
 0x15f   : > { %v592_v7 = vmul.f32 %v567_v3, %v421_v44  ;;  %v606_v8 = vmul.f32 %v581_v4, %v477_v45  ;;  %v582_v9 = vmin.f32 %v557_v5, 6.0  ;;  %v429_v10 = vpop.f32.mrb[8].mxu0  ;;  %v485_v11 = vpop.f32.mrb[8].mxu1 }
 0x160   : > { %v593_v12 = vmul.f32 %v568_v6, %v424_v53  ;;  %v519_v13 = vadd.f32 3.0, %v429_v10  ;;  %v1086_v14 = vpop.f32.mrb[9].mxu0  ;;  %v533_v15 = vadd.f32 3.0, %v485_v11  ;;  %v1114_v16 = vpop.f32.mrb[9].mxu1 }
 0x161   : > { %v617_v17 = vmul.f32 0.16666667, %v592_v7  ;;  %v631_v18 = vmul.f32 0.16666667, %v606_v8  ;;  %v607_v19 = vmul.f32 %v582_v9, %v480_v55  ;;  %v432_v20 = vpop.f32.mrb[10].mxu0  ;;  %v488_v21 = vpop.f32.mrb[10].mxu1 }
 0x162   : > { %v618_v22 = vmul.f32 0.16666667, %v593_v12  ;;  %v544_v23 = vmax.f32 %v519_v13, 0.0  ;;  %v520_v24 = vadd.f32 3.0, %v432_v20  ;;  %v558_v25 = vmax.f32 %v533_v15, 0.0  ;;  %v1087_v26 = vpop.f32.mrb[11].mxu0 }
 0x163   : > { %v632_v27 = vmul.f32 0.16666667, %v607_v19  ;;  %v534_v28 = vadd.f32 3.0, %v488_v21  ;;  %v1115_v29 = vpop.f32.mrb[11].mxu1 }
 0x164   : > { %v976_v30 = vpack.c.bf16 %v618_v22, %v617_v17  ;;  %v569_v31 = vmin.f32 %v544_v23, 6.0  ;;  %v545_v32 = vmax.f32 %v520_v24, 0.0  ;;  %v583_v33 = vmin.f32 %v558_v25, 6.0 }
 0x165   : > { %v1011_v34 = vpack.c.bf16 %v632_v27, %v631_v18  ;;  %v559_v35 = vmax.f32 %v534_v28, 0.0 }
 0x166   : > { %1028 = vst [vmem:[%s1643_s17 + $0x8] sm:$0xff] %v976_v30   ;;  %v594_v36 = vmul.f32 %v569_v31, %v429_v10  ;;  %v570_v37 = vmin.f32 %v545_v32, 6.0  ;;  %v608_v38 = vmul.f32 %v583_v33, %v485_v11 }
 0x167   : > { %1035 = vst [vmem:[%s1643_s17 + $0x40] sm:$0xff] %v1011_v34   ;;  %v584_v39 = vmin.f32 %v559_v35, 6.0  ;;  %v437_v40 = vpop.f32.mrb[12].mxu0  ;;  %v493_v41 = vpop.f32.mrb[12].mxu1 }
 0x168   : > { %v619_v42 = vmul.f32 0.16666667, %v594_v36  ;;  %v595_v43 = vmul.f32 %v570_v37, %v432_v20  ;;  %v521_v44 = vadd.f32 3.0, %v437_v40  ;;  %v1090_v45 = vpop.f32.mrb[13].mxu0  ;;  %v633_v46 = vmul.f32 0.16666667, %v608_v38 }
 0x169   : > { %v609_v47 = vmul.f32 %v584_v39, %v488_v21  ;;  %v440_v48 = vpop.f32.mrb[14].mxu0  ;;  %v535_v49 = vadd.f32 3.0, %v493_v41  ;;  %v1118_v50 = vpop.f32.mrb[13].mxu1 }
 0x16a   : > { %v620_v51 = vmul.f32 0.16666667, %v595_v43  ;;  %v546_v52 = vmax.f32 %v521_v44, 0.0  ;;  %v522_v53 = vadd.f32 3.0, %v440_v48  ;;  %v1091_v54 = vpop.f32.mrb[15].mxu0  ;;  %v496_v55 = vpop.f32.mrb[14].mxu1 }
 0x16b   : > { %v634_v56 = vmul.f32 0.16666667, %v609_v47  ;;  %v560_v57 = vmax.f32 %v535_v49, 0.0  ;;  %v536_v58 = vadd.f32 3.0, %v496_v55  ;;  %v1119_v59 = vpop.f32.mrb[15].mxu1 }
 0x16c   : > { %v981_v60 = vpack.c.bf16 %v620_v51, %v619_v42  ;;  %v571_v61 = vmin.f32 %v546_v52, 6.0  ;;  %v547_v62 = vmax.f32 %v522_v53, 0.0 }
 0x16d   : > { %v1016_v63 = vpack.c.bf16 %v634_v56, %v633_v46  ;;  %v585_v0 = vmin.f32 %v560_v57, 6.0  ;;  %v561_v1 = vmax.f32 %v536_v58, 0.0 }
 0x16e   : > { %1029 = vst [vmem:[%s1643_s17 + $0x10] sm:$0xff] %v981_v60   ;;  %v596_v2 = vmul.f32 %v571_v61, %v437_v40  ;;  %v572_v3 = vmin.f32 %v547_v62, 6.0 }
 0x16f   : > { %1036 = vst [vmem:[%s1643_s17 + $0x48] sm:$0xff] %v1016_v63   ;;  %v610_v4 = vmul.f32 %v585_v0, %v493_v41  ;;  %v586_v5 = vmin.f32 %v561_v1, 6.0  ;;  %v445_v6 = vpop.f32.mrb[16].mxu0  ;;  %v501_v7 = vpop.f32.mrb[16].mxu1 }
 0x170   : > { %v597_v8 = vmul.f32 %v572_v3, %v440_v48  ;;  %v523_v9 = vadd.f32 3.0, %v445_v6  ;;  %v1094_v10 = vpop.f32.mrb[17].mxu0  ;;  %v537_v11 = vadd.f32 3.0, %v501_v7  ;;  %v1122_v12 = vpop.f32.mrb[17].mxu1  ;;  %v621_v13 = vmul.f32 0.16666667, %v596_v2 }
 0x171   : > { %v635_v14 = vmul.f32 0.16666667, %v610_v4  ;;  %v611_v15 = vmul.f32 %v586_v5, %v496_v55  ;;  %v448_v16 = vpop.f32.mrb[18].mxu0  ;;  %v504_v17 = vpop.f32.mrb[18].mxu1 }
 0x172   : > { %v622_v18 = vmul.f32 0.16666667, %v597_v8  ;;  %v548_v19 = vmax.f32 %v523_v9, 0.0  ;;  %v524_v20 = vadd.f32 3.0, %v448_v16  ;;  %v562_v21 = vmax.f32 %v537_v11, 0.0  ;;  %v1095_v22 = vpop.f32.mrb[19].mxu0 }
 0x173   : > { %v636_v23 = vmul.f32 0.16666667, %v611_v15  ;;  %v538_v24 = vadd.f32 3.0, %v504_v17  ;;  %v1123_v25 = vpop.f32.mrb[19].mxu1 }
 0x174   : > { %v986_v26 = vpack.c.bf16 %v622_v18, %v621_v13  ;;  %v573_v27 = vmin.f32 %v548_v19, 6.0  ;;  %v549_v28 = vmax.f32 %v524_v20, 0.0  ;;  %v587_v29 = vmin.f32 %v562_v21, 6.0 }
 0x175   : > { %v1021_v30 = vpack.c.bf16 %v636_v23, %v635_v14  ;;  %v563_v31 = vmax.f32 %v538_v24, 0.0 }
 0x176   : > { %1030 = vst [vmem:[%s1643_s17 + $0x18] sm:$0xff] %v986_v26   ;;  %v598_v32 = vmul.f32 %v573_v27, %v445_v6  ;;  %v574_v33 = vmin.f32 %v549_v28, 6.0  ;;  %v612_v34 = vmul.f32 %v587_v29, %v501_v7 }
 0x177   : > { %1037 = vst [vmem:[%s1643_s17 + $0x50] sm:$0xff] %v1021_v30   ;;  %v588_v35 = vmin.f32 %v563_v31, 6.0  ;;  %v453_v36 = vpop.f32.mrb[20].mxu0  ;;  %v509_v37 = vpop.f32.mrb[20].mxu1 }
 0x178   : > { %v623_v38 = vmul.f32 0.16666667, %v598_v32  ;;  %v599_v39 = vmul.f32 %v574_v33, %v448_v16  ;;  %v525_v40 = vadd.f32 3.0, %v453_v36  ;;  %v1098_v41 = vpop.f32.mrb[21].mxu0  ;;  %v637_v42 = vmul.f32 0.16666667, %v612_v34 }
 0x179   : > { %v613_v43 = vmul.f32 %v588_v35, %v504_v17  ;;  %v456_v44 = vpop.f32.mrb[22].mxu0  ;;  %v539_v45 = vadd.f32 3.0, %v509_v37  ;;  %v1126_v46 = vpop.f32.mrb[21].mxu1 }
 0x17a   : > { %v624_v47 = vmul.f32 0.16666667, %v599_v39  ;;  %v550_v48 = vmax.f32 %v525_v40, 0.0  ;;  %v526_v49 = vadd.f32 3.0, %v456_v44  ;;  %v1099_v50 = vpop.f32.mrb[23].mxu0  ;;  %v512_v51 = vpop.f32.mrb[22].mxu1 }
 0x17b   : > { %v638_v52 = vmul.f32 0.16666667, %v613_v43  ;;  %v564_v53 = vmax.f32 %v539_v45, 0.0  ;;  %v1127_v54 = vpop.f32.mrb[23].mxu1 }
 0x17c   : > { %v991_v55 = vpack.c.bf16 %v624_v47, %v623_v38  ;;  %v575_v56 = vmin.f32 %v550_v48, 6.0  ;;  %v551_v57 = vmax.f32 %v526_v49, 0.0 }
 0x17d   : > { %v1026_v58 = vpack.c.bf16 %v638_v52, %v637_v42  ;;  %v589_v59 = vmin.f32 %v564_v53, 6.0 }
 0x17e   : > { %1031 = vst [vmem:[%s1643_s17 + $0x20] sm:$0xff] %v991_v55   ;;  %v600_v60 = vmul.f32 %v575_v56, %v453_v36  ;;  %v576_v61 = vmin.f32 %v551_v57, 6.0 }
 0x17f   : > { %1038 = vst [vmem:[%s1643_s17 + $0x58] sm:$0xff] %v1026_v58   ;;  %v614_v62 = vmul.f32 %v589_v59, %v509_v37  ;;  %v461_v63 = vpop.f32.mrb[24].mxu0 }
 0x180   : > { %v601_v0 = vmul.f32 %v576_v61, %v456_v44  ;;  %v527_v1 = vadd.f32 3.0, %v461_v63  ;;  %v1102_v2 = vpop.f32.mrb[25].mxu0  ;;  %v625_v3 = vmul.f32 0.16666667, %v600_v60 }
 0x181   : > { %v639_v4 = vmul.f32 0.16666667, %v614_v62  ;;  %v464_v5 = vpop.f32.mrb[26].mxu0 }
 0x182   : > { %v626_v6 = vmul.f32 0.16666667, %v601_v0  ;;  %v552_v7 = vmax.f32 %v527_v1, 0.0  ;;  %v528_v8 = vadd.f32 3.0, %v464_v5  ;;  %v1103_v9 = vpop.f32.mrb[27].mxu0 }
 0x183   : > { %v967_v10 = vpack.c.bf16 %v639_v4, %v639_v4 }
 0x184   : > { %v996_v11 = vpack.c.bf16 %v626_v6, %v625_v3  ;;  %v577_v12 = vmin.f32 %v552_v7, 6.0  ;;  %v553_v13 = vmax.f32 %v528_v8, 0.0 }
 0x185   : > { %765 = vst [vmem:[%s1643_s17 + $0x60] sm:$0xf] %v967_v10 }
 0x186   : > { %1032 = vst [vmem:[%s1643_s17 + $0x28] sm:$0xff] %v996_v11   ;;  %v602_v14 = vmul.f32 %v577_v12, %v461_v63  ;;  %v578_v15 = vmin.f32 %v553_v13, 6.0 }
 0x188   : > { %v603_v16 = vmul.f32 %v578_v15, %v464_v5  ;;  %v627_v17 = vmul.f32 0.16666667, %v602_v14 }
 0x18a   : > { %v628_v18 = vmul.f32 0.16666667, %v603_v16 }
 0x18c   : > { %v1001_v19 = vpack.c.bf16 %v628_v18, %v627_v17 }
 0x18e   : > { %1033 = vst [vmem:[%s1643_s17 + $0x30] sm:$0xff] %v1001_v19  }
 0x18f   : > { %1319 = shalt.err (!%p1316_p5)
}
 0x190   : > { %s1320_s26 = scalar_lea.hbm %s1662_s30, 1600  ;;  %s1324_s16 = scalar_lea.hbm %s1716_s2, 3200 }
 0x191   : > { %p1321_p9 = scmp.ne.s32.totalorder %s1662_s30, %s1320_s26  ;;  %p1325_p3 = scmp.lt.u32.totalorder %s1662_s30, %s1716_s2 }
 0x192   : > { %p1326_p7 = scmp.lt.u32.totalorder %s1324_s16, %s1320_s26  ;;  %p1328_p4 = scmp.lt.u32.totalorder %s1320_s26, %s1662_s30 }
 0x193   : > { %p1322_p1 = pnand %p1321_p9, %p1513_p10 }
 0x194   : > { %p1327_p11 = por %p1326_p7, %p1325_p3 }
 0x195   : > { %p1323_p2 = pneg %p1322_p1 }
 0x196   : > { %p1329_p6 = por %p1328_p4, %p1327_p11 }
 0x198   : > { %p1330_p8 = pnand %p1329_p6, %p1323_p2 }
 0x19a   : > { %1333 = shalt.err (!%p1330_p8)
}
 0x19b   : > { %s1401_s3 = smov 64   ;;  %s1402_s17 = smov 4  }
 0x19c   : > { %1154 = dma.vmem_to_hbm [thread:$0]  (%p1513_p10), %s1664_s21, 1600, %s1662_s30, %s767_s5, %s1401_s3, %s1401_s3, %s1402_s17  }
 0x19d PF: > { %s798_s19 = sand.u32 1, %s1372_s9   ;;  %p1733_p12 = scmp.ne.s32.totalorder %s1724_s20, 0 }
 0x19e   : > { %p1734_p13 = scmp.ge.s32.totalorder %s1392_s14, 2  ;;  %s799_s6 = scalar_lea.sflag [#allocation4], %s798_s19 }
 0x1a0   : > { %p1165_p0 = pnand %p1734_p13, %p1733_p12 }
 0x1a2   : > { %1367 = dma.done.wait (!%p1165_p0), %s799_s6, 1600  }
 0x1a3   : > { %1369 = vsyncadd (!%p1165_p0), %s799_s6, 4294965696  ;;  %s19_s14 = sadd.s32 1, %s1392_s14   ;;  %s1735_s9 = smov %s1376_s10 }
 0x1a4   : > { %p16_p5 = scmp.ge.s32.totalorder %s19_s14, 4   ;;  %s1736_s10 = smov %s1380_s11 }
 0x1a5   : > { %s1737_s11 = smov %s1522_s28  ;;  %s1738_s12 = smov %s1388_s13 }
 0x1a6   : > { %s1739_s13 = smov %s1741_s25  ;;  %18 = sbr.rel (!%p16_p5) target bundleno = 7 (0x7), region = 78 }
 0x1ad   :  { %804 = vsyncpa [#allocation3], 1 }
 0x1ae   :  { %806 = vsyncpa [#allocation3 + $0x1], 1 }
 0x1af   :  { %807 = vsyncpa [#allocation6], 1 }
 0x1b0   :  { %808 = vsyncpa [#allocation4], 1 }
 0x1b1   :  { %810 = vsyncpa [#allocation4 + $0x1], 1 }

</bundles_post_ra>
